<compile_context>
chip_gen: v6e
topology: v6e:2x2x1
jax: 0.10.0
libtpu: 0.0.40
codegen_flags: <defaults>
</compile_context>

<pallas_src>
import math

import jax
import jax.numpy as jnp
from jax.experimental import pallas as pl
from jax.experimental.pallas import tpu as pltpu


C_PAD = 128  # lane-width channel padding used for every internal activation

_VMEM = pl.BlockSpec(memory_space=pltpu.MemorySpace.VMEM)


# ---------------------------------------------------------------------------
# Fused kernel
# ---------------------------------------------------------------------------
def _make_end_conv_kernel(n_deep, n_hid, kernel_size, eps):
    """Builds the fused EndConv kernel.

    Ref order (as passed by pallas_call):
      x  (N, L, C_PAD) bf16,
      w0 (C_PAD, 3*C_PAD) bf16, b0 (1, 3*C_PAD) f32,       # layer 0 conv|gate|down
      [wi (C_PAD, 2*C_PAD) bf16, bi (1, 2*C_PAD) f32] * n_deep,  # tap-packed
      wf (C_PAD, C_PAD) bf16, bf (1, C_PAD) f32,           # final 1x1 conv
      o  (N, L, C_PAD) f32                                 # output
    """
    K = kernel_size

    def kernel(*refs):
        x_ref, w0_ref, b0_ref = refs[0], refs[1], refs[2]
        deep_refs = refs[3:3 + 2 * n_deep]
        wf_ref = refs[3 + 2 * n_deep]
        bf_ref = refs[4 + 2 * n_deep]
        o_ref = refs[5 + 2 * n_deep]

        N, L, C = x_ref.shape
        NL = N * L
        inv_m = 1.0 / NL

        def bn_relu(y):
            # BatchNorm1d, training-mode batch stats (biased var), default
            # affine (weight=1, bias=0).  Centered two-pass variance: no
            # E[x^2]-mean^2 cancellation, no clamp needed.
            mean = jnp.sum(y, axis=0, keepdims=True) * inv_m
            d = y - mean
            var = jnp.sum(d * d, axis=0, keepdims=True) * inv_m
            return jnp.maximum(d * jax.lax.rsqrt(var + eps), 0.0)   # ReLU

        def glu(conv, gate_pre, res):
            # activate=False in EndConv -> no tanh on the conv half.
            gate = 0.5 * jnp.tanh(0.5 * gate_pre) + 0.5     # sigmoid via one EUP tanh
            return bn_relu(conv * gate + res * (1.0 - gate))

        # ---- layer 0: kernel_size=1; conv|gate|downsample fused in 1 matmul ----
        x_bf = x_ref[...].reshape(NL, C)                    # bf16
        y0 = jnp.dot(x_bf, w0_ref[...],
                     preferred_element_type=jnp.float32) + b0_ref[...]
        # slices at lane offsets 0 / 128 / 256 — all vreg boundaries (free)
        h = glu(y0[:, :C], y0[:, C:2 * C], y0[:, 2 * C:])   # (NL, C) f32

        # ---- deep layers: kernel_size=K causal conv, identity residual ----
        if n_deep:
            # row position inside its own batch element, for causal masking
            row = jax.lax.broadcasted_iota(jnp.int32, (NL, C), 0)
            pos = row % L
            for li in range(n_deep):
                w_ref = deep_refs[2 * li]
                b_ref = deep_refs[2 * li + 1]
                # Lane-pack the K time-shifted copies of h into ONE 128-lane
                # LHS: the shift-s copy (h at time t-s, zero for t<s) lives at
                # lanes [s*n_hid, (s+1)*n_hid).  Lanes >= n_hid of h are exactly
                # zero, so the placement adds are exact.
                lhs = h
                for s in range(1, K):
                    sh = pltpu.roll(h, s, axis=0)            # row i <- row i-s
                    sh = jnp.where(pos >= s, sh, 0.0)        # zero wrapped rows
                    lhs = lhs + pltpu.roll(sh, s * n_hid, axis=1)
                cg = jnp.dot(lhs.astype(jnp.bfloat16), w_ref[...],
                             preferred_element_type=jnp.float32) + b_ref[...]
                h = glu(cg[:, :C], cg[:, C:], h)

        # ---- final 1x1 Conv1d ----
        out = jnp.dot(h.astype(jnp.bfloat16), wf_ref[...],
                      preferred_element_type=jnp.float32) + bf_ref[...]
        o_ref[...] = out.reshape(N, L, C).astype(o_ref.dtype)

    return kernel


# ---------------------------------------------------------------------------
# Wrapper
# ---------------------------------------------------------------------------
def end_conv(x_ncl, params):
    """EndConv forward. x_ncl: (N, Cin, L) PyTorch layout -> (N, Cout, L)."""
    N, cin, L = x_ncl.shape
    deep = params["deep"]
    n_deep = len(deep)
    K = params["kernel_size"]

    # tiny boundary glue: NCL -> NLC, pad channels to 128 lanes, cast to bf16
    x = jnp.transpose(x_ncl, (0, 2, 1))
    x = jnp.pad(x, ((0, 0), (0, 0), (0, C_PAD - cin))).astype(jnp.bfloat16)

    operands = [x, params["w0"], params["b0"]]
    for w, b in deep:
        operands += [w, b]
    operands += [params["wf"], params["bf"]]

    out_pad = pl.pallas_call(
        _make_end_conv_kernel(n_deep=n_deep, n_hid=params["nhid"],
                              kernel_size=K, eps=1e-5),
        out_shape=jax.ShapeDtypeStruct((N, L, C_PAD), jnp.float32),
        in_specs=[_VMEM] * len(operands),
        out_specs=_VMEM,
    )(*operands)

    out = out_pad[:, :, :params["out_channels"]]            # drop lane padding
    return jnp.transpose(out, (0, 2, 1))                    # NLC -> NCL


# ---------------------------------------------------------------------------
# Deterministic, pre-packed parameter construction
# ---------------------------------------------------------------------------
def make_end_conv_params(key, in_channels, out_channels, nhid_channels, layer=3):
    gain = math.sqrt(2.0)
    K = 3                                                    # EndConv deep-layer kernel_size
    assert K * nhid_channels <= C_PAD, \
        "tap-packed deep weights require kernel_size * nhid <= 128"

    def xavier(k, cout, cin, ksize):
        fan_in, fan_out = cin * ksize, cout * ksize
        bound = gain * math.sqrt(6.0 / (fan_in + fan_out))
        w = jax.random.uniform(k, (cout, cin, ksize), jnp.float32, -bound, bound)
        return jnp.transpose(w, (2, 1, 0))                   # (k, cin, cout)

    params = {"out_channels": out_channels, "nhid": nhid_channels,
              "kernel_size": K, "deep": []}

    for i in range(layer):
        key, k1, k2, k3 = jax.random.split(key, 4)
        if i == 0:
            cin, cout = in_channels, nhid_channels
            wc = xavier(k1, cout, cin, 1)[0]                 # (cin, cout)
            wg = xavier(k2, cout, cin, 1)[0]
            wd = xavier(k3, cout, cin, 1)[0]
            # fuse [conv | gate | downsample] along Cout -> single MXU matmul
            w0 = jnp.zeros((C_PAD, 3 * C_PAD), jnp.float32)
            w0 = w0.at[:cin, :cout].set(wc)
            w0 = w0.at[:cin, C_PAD:C_PAD + cout].set(wg)
            w0 = w0.at[:cin, 2 * C_PAD:2 * C_PAD + cout].set(wd)
            b0 = jnp.zeros((1, 3 * C_PAD), jnp.float32)
            b0 = (b0.at[:, :cout].set(0.1)
                    .at[:, C_PAD:C_PAD + cout].set(0.1)
                    .at[:, 2 * C_PAD:2 * C_PAD + cout].set(0.1))
            params["w0"], params["b0"] = w0.astype(jnp.bfloat16), b0
        else:
            cin = cout = nhid_channels
            wc = xavier(k1, cout, cin, K)                    # (K, cin, cout)
            wg = xavier(k2, cout, cin, K)
            _ = xavier(k3, cout, cin, 1)                     # module's unused downsample (cin == cout)
            # Tap-packed dense weight: rows [s*cin, (s+1)*cin) hold tap
            # t = K-1-s, matching the kernel's lane-packed LHS (the shift-s
            # copy of the activations sits at lanes [s*cin, (s+1)*cin)).
            w = jnp.zeros((C_PAD, 2 * C_PAD), jnp.float32)
            for t in range(K):
                s = K - 1 - t
                w = w.at[s * cin:s * cin + cin, :cout].set(wc[t])
                w = w.at[s * cin:s * cin + cin, C_PAD:C_PAD + cout].set(wg[t])
            b = jnp.zeros((1, 2 * C_PAD), jnp.float32)
            b = b.at[:, :cout].set(0.1).at[:, C_PAD:C_PAD + cout].set(0.1)
            params["deep"].append((w.astype(jnp.bfloat16), b))

    # final nn.Conv1d(nhid, out, 1): default torch (kaiming-uniform) init
    key, kw, kb = jax.random.split(key, 3)
    bound = 1.0 / math.sqrt(nhid_channels)
    fw = jax.random.uniform(kw, (out_channels, nhid_channels, 1),
                            jnp.float32, -bound, bound)
    fw = jnp.transpose(fw, (2, 1, 0))[0]                     # (nhid, out)
    wfp = jnp.zeros((C_PAD, C_PAD), jnp.float32)
    wfp = wfp.at[:nhid_channels, :out_channels].set(fw)
    params["wf"] = wfp.astype(jnp.bfloat16)
    fb = jax.random.uniform(kb, (out_channels,), jnp.float32, -bound, bound)
    params["bf"] = jnp.zeros((1, C_PAD), jnp.float32).at[0, :out_channels].set(fb)
    return params


# ---------------------------------------------------------------------------
if __name__ == "__main__":
    N, IN_CH, L = 2, 4, 16
    NHID, OUT_CH, LAYERS = 32, 8, 3

    key = jax.random.PRNGKey(0)
    key, kx, kp = jax.random.split(key, 3)
    x = jax.random.normal(kx, (N, IN_CH, L), jnp.float32)    # PyTorch NCL input
    params = make_end_conv_params(kp, IN_CH, OUT_CH, NHID, LAYERS)

    out = end_conv(x, params)
    out = jax.block_until_ready(out)
    assert out.shape == (N, OUT_CH, L), out.shape
    assert bool(jnp.all(jnp.isfinite(out)))
    print("KERNEL_OK")
</pallas_src>

<mosaic_0001>
module attributes {stable_mosaic.version = 11 : i64} {
  func.func @kernel(%arg0: memref<2x16x128xbf16, #tpu.memory_space<vmem>>, %arg1: memref<128x384xbf16, #tpu.memory_space<vmem>>, %arg2: memref<1x384xf32, #tpu.memory_space<vmem>>, %arg3: memref<128x256xbf16, #tpu.memory_space<vmem>>, %arg4: memref<1x256xf32, #tpu.memory_space<vmem>>, %arg5: memref<128x256xbf16, #tpu.memory_space<vmem>>, %arg6: memref<1x256xf32, #tpu.memory_space<vmem>>, %arg7: memref<128x128xbf16, #tpu.memory_space<vmem>>, %arg8: memref<1x128xf32, #tpu.memory_space<vmem>>, %arg9: memref<2x16x128xf32, #tpu.memory_space<vmem>>) attributes {dimension_semantics = [], scalar_prefetch = 0 : i64, scratch_operands = 0 : i64, tpu.core_type = #tpu.core_type<tc>} {
    %c0 = arith.constant 0 : index
    %c0_0 = arith.constant 0 : index
    %c0_1 = arith.constant 0 : index
    %0 = vector.load %arg0[%c0, %c0_0, %c0_1] : memref<2x16x128xbf16, #tpu.memory_space<vmem>>, vector<2x16x128xbf16>
    %1 = vector.shape_cast %0 : vector<2x16x128xbf16> to vector<32x128xbf16>
    %c0_2 = arith.constant 0 : index
    %c0_3 = arith.constant 0 : index
    %2 = vector.load %arg1[%c0_2, %c0_3] : memref<128x384xbf16, #tpu.memory_space<vmem>>, vector<128x384xbf16>
    %cst = arith.constant dense<0.000000e+00> : vector<32x384xf32>
    %3 = tpu.matmul %1, %2, %cst {dimension_numbers = #tpu.dot_dimension_numbers<[1], [0], [0], [1], [0, 0, 1, 1], [], []>} : vector<32x128xbf16>, vector<128x384xbf16>, vector<32x384xf32> -> vector<32x384xf32>
    %c0_4 = arith.constant 0 : index
    %c0_5 = arith.constant 0 : index
    %4 = vector.load %arg2[%c0_4, %c0_5] : memref<1x384xf32, #tpu.memory_space<vmem>>, vector<1x384xf32>
    %5 = vector.broadcast %4 : vector<1x384xf32> to vector<32x384xf32>
    %6 = arith.addf %3, %5 : vector<32x384xf32>
    %7 = vector.extract_strided_slice %6 {offsets = [0, 0], sizes = [32, 128], strides = [1, 1]} : vector<32x384xf32> to vector<32x128xf32>
    %8 = vector.extract_strided_slice %6 {offsets = [0, 128], sizes = [32, 128], strides = [1, 1]} : vector<32x384xf32> to vector<32x128xf32>
    %9 = vector.extract_strided_slice %6 {offsets = [0, 256], sizes = [32, 128], strides = [1, 1]} : vector<32x384xf32> to vector<32x128xf32>
    %cst_6 = arith.constant 5.000000e-01 : f32
    %10 = vector.broadcast %cst_6 : f32 to vector<32x128xf32>
    %11 = arith.mulf %10, %8 : vector<32x128xf32>
    %12 = math.tanh %11 : vector<32x128xf32>
    %cst_7 = arith.constant 5.000000e-01 : f32
    %13 = vector.broadcast %cst_7 : f32 to vector<32x128xf32>
    %14 = arith.mulf %13, %12 : vector<32x128xf32>
    %cst_8 = arith.constant 5.000000e-01 : f32
    %15 = vector.broadcast %cst_8 : f32 to vector<32x128xf32>
    %16 = arith.addf %14, %15 : vector<32x128xf32>
    %17 = arith.mulf %7, %16 : vector<32x128xf32>
    %cst_9 = arith.constant 1.000000e+00 : f32
    %18 = vector.broadcast %cst_9 : f32 to vector<32x128xf32>
    %19 = arith.subf %18, %16 : vector<32x128xf32>
    %20 = arith.mulf %9, %19 : vector<32x128xf32>
    %21 = arith.addf %17, %20 : vector<32x128xf32>
    %cst_10 = arith.constant dense<0.000000e+00> : vector<128xf32>
    %22 = vector.multi_reduction <add>, %21, %cst_10 [0] : vector<32x128xf32> to vector<128xf32>
    %23 = vector.shape_cast %22 : vector<128xf32> to vector<1x128xf32>
    %cst_11 = arith.constant 3.125000e-02 : f32
    %24 = vector.broadcast %cst_11 : f32 to vector<1x128xf32>
    %25 = arith.mulf %23, %24 : vector<1x128xf32>
    %26 = vector.broadcast %25 : vector<1x128xf32> to vector<32x128xf32>
    %27 = arith.subf %21, %26 : vector<32x128xf32>
    %28 = arith.mulf %27, %27 : vector<32x128xf32>
    %cst_12 = arith.constant dense<0.000000e+00> : vector<128xf32>
    %29 = vector.multi_reduction <add>, %28, %cst_12 [0] : vector<32x128xf32> to vector<128xf32>
    %30 = vector.shape_cast %29 : vector<128xf32> to vector<1x128xf32>
    %cst_13 = arith.constant 3.125000e-02 : f32
    %31 = vector.broadcast %cst_13 : f32 to vector<1x128xf32>
    %32 = arith.mulf %30, %31 : vector<1x128xf32>
    %cst_14 = arith.constant 9.99999974E-6 : f32
    %33 = vector.broadcast %cst_14 : f32 to vector<1x128xf32>
    %34 = arith.addf %32, %33 : vector<1x128xf32>
    %35 = math.rsqrt %34 : vector<1x128xf32>
    %36 = vector.broadcast %35 : vector<1x128xf32> to vector<32x128xf32>
    %37 = arith.mulf %27, %36 : vector<32x128xf32>
    %cst_15 = arith.constant 0.000000e+00 : f32
    %38 = vector.broadcast %cst_15 : f32 to vector<32x128xf32>
    %39 = arith.maximumf %37, %38 : vector<32x128xf32>
    %40 = tpu.iota {dimensions = array<i32: 0>} : vector<32x128xi32>
    %c16_i32 = arith.constant 16 : i32
    %c0_i32 = arith.constant 0 : i32
    %41 = arith.cmpi eq, %c16_i32, %c0_i32 : i32
    %c1_i32 = arith.constant 1 : i32
    %42 = arith.select %41, %c1_i32, %c16_i32 : i32
    %43 = vector.broadcast %42 : i32 to vector<32x128xi32>
    %44 = arith.remsi %40, %43 : vector<32x128xi32>
    %c0_i32_16 = arith.constant 0 : i32
    %45 = vector.broadcast %c0_i32_16 : i32 to vector<32x128xi32>
    %46 = arith.cmpi ne, %44, %45 : vector<32x128xi32>
    %c0_i32_17 = arith.constant 0 : i32
    %47 = vector.broadcast %c0_i32_17 : i32 to vector<32x128xi32>
    %48 = arith.cmpi slt, %44, %47 : vector<32x128xi32>
    %c0_i32_18 = arith.constant 0 : i32
    %49 = arith.cmpi slt, %42, %c0_i32_18 : i32
    %50 = vector.broadcast %49 : i1 to vector<32x128xi1>
    %51 = vector.broadcast %50 : vector<32x128xi1> to vector<32x128xi1>
    %52 = arith.xori %48, %51 : vector<32x128xi1>
    %53 = arith.andi %52, %46 : vector<32x128xi1>
    %54 = vector.broadcast %42 : i32 to vector<32x128xi32>
    %55 = arith.addi %44, %54 : vector<32x128xi32>
    %56 = arith.select %53, %55, %44 : vector<32x128xi1>, vector<32x128xi32>
    %c1_i32_19 = arith.constant 1 : i32
    %57 = tpu.dynamic_rotate %39 by %c1_i32_19 dim 0 : vector<32x128xf32>, i32 -> vector<32x128xf32>
    %c1_i32_20 = arith.constant 1 : i32
    %58 = vector.broadcast %c1_i32_20 : i32 to vector<32x128xi32>
    %59 = arith.cmpi sge, %56, %58 : vector<32x128xi32>
    %cst_21 = arith.constant 0.000000e+00 : f32
    %60 = vector.broadcast %cst_21 : f32 to vector<32x128xf32>
    %61 = arith.select %59, %57, %60 : vector<32x128xi1>, vector<32x128xf32>
    %c32_i32 = arith.constant 32 : i32
    %62 = tpu.dynamic_rotate %61 by %c32_i32 dim 1 : vector<32x128xf32>, i32 -> vector<32x128xf32>
    %63 = arith.addf %39, %62 : vector<32x128xf32>
    %c2_i32 = arith.constant 2 : i32
    %64 = tpu.dynamic_rotate %39 by %c2_i32 dim 0 : vector<32x128xf32>, i32 -> vector<32x128xf32>
    %c2_i32_22 = arith.constant 2 : i32
    %65 = vector.broadcast %c2_i32_22 : i32 to vector<32x128xi32>
    %66 = arith.cmpi sge, %56, %65 : vector<32x128xi32>
    %cst_23 = arith.constant 0.000000e+00 : f32
    %67 = vector.broadcast %cst_23 : f32 to vector<32x128xf32>
    %68 = arith.select %66, %64, %67 : vector<32x128xi1>, vector<32x128xf32>
    %c64_i32 = arith.constant 64 : i32
    %69 = tpu.dynamic_rotate %68 by %c64_i32 dim 1 : vector<32x128xf32>, i32 -> vector<32x128xf32>
    %70 = arith.addf %63, %69 : vector<32x128xf32>
    %71 = arith.truncf %70 : vector<32x128xf32> to vector<32x128xbf16>
    %c0_24 = arith.constant 0 : index
    %c0_25 = arith.constant 0 : index
    %72 = vector.load %arg3[%c0_24, %c0_25] : memref<128x256xbf16, #tpu.memory_space<vmem>>, vector<128x256xbf16>
    %cst_26 = arith.constant dense<0.000000e+00> : vector<32x256xf32>
    %73 = tpu.matmul %71, %72, %cst_26 {dimension_numbers = #tpu.dot_dimension_numbers<[1], [0], [0], [1], [0, 0, 1, 1], [], []>} : vector<32x128xbf16>, vector<128x256xbf16>, vector<32x256xf32> -> vector<32x256xf32>
    %c0_27 = arith.constant 0 : index
    %c0_28 = arith.constant 0 : index
    %74 = vector.load %arg4[%c0_27, %c0_28] : memref<1x256xf32, #tpu.memory_space<vmem>>, vector<1x256xf32>
    %75 = vector.broadcast %74 : vector<1x256xf32> to vector<32x256xf32>
    %76 = arith.addf %73, %75 : vector<32x256xf32>
    %77 = vector.extract_strided_slice %76 {offsets = [0, 0], sizes = [32, 128], strides = [1, 1]} : vector<32x256xf32> to vector<32x128xf32>
    %78 = vector.extract_strided_slice %76 {offsets = [0, 128], sizes = [32, 128], strides = [1, 1]} : vector<32x256xf32> to vector<32x128xf32>
    %cst_29 = arith.constant 5.000000e-01 : f32
    %79 = vector.broadcast %cst_29 : f32 to vector<32x128xf32>
    %80 = arith.mulf %79, %78 : vector<32x128xf32>
    %81 = math.tanh %80 : vector<32x128xf32>
    %cst_30 = arith.constant 5.000000e-01 : f32
    %82 = vector.broadcast %cst_30 : f32 to vector<32x128xf32>
    %83 = arith.mulf %82, %81 : vector<32x128xf32>
    %cst_31 = arith.constant 5.000000e-01 : f32
    %84 = vector.broadcast %cst_31 : f32 to vector<32x128xf32>
    %85 = arith.addf %83, %84 : vector<32x128xf32>
    %86 = arith.mulf %77, %85 : vector<32x128xf32>
    %cst_32 = arith.constant 1.000000e+00 : f32
    %87 = vector.broadcast %cst_32 : f32 to vector<32x128xf32>
    %88 = arith.subf %87, %85 : vector<32x128xf32>
    %89 = arith.mulf %39, %88 : vector<32x128xf32>
    %90 = arith.addf %86, %89 : vector<32x128xf32>
    %cst_33 = arith.constant dense<0.000000e+00> : vector<128xf32>
    %91 = vector.multi_reduction <add>, %90, %cst_33 [0] : vector<32x128xf32> to vector<128xf32>
    %92 = vector.shape_cast %91 : vector<128xf32> to vector<1x128xf32>
    %cst_34 = arith.constant 3.125000e-02 : f32
    %93 = vector.broadcast %cst_34 : f32 to vector<1x128xf32>
    %94 = arith.mulf %92, %93 : vector<1x128xf32>
    %95 = vector.broadcast %94 : vector<1x128xf32> to vector<32x128xf32>
    %96 = arith.subf %90, %95 : vector<32x128xf32>
    %97 = arith.mulf %96, %96 : vector<32x128xf32>
    %cst_35 = arith.constant dense<0.000000e+00> : vector<128xf32>
    %98 = vector.multi_reduction <add>, %97, %cst_35 [0] : vector<32x128xf32> to vector<128xf32>
    %99 = vector.shape_cast %98 : vector<128xf32> to vector<1x128xf32>
    %cst_36 = arith.constant 3.125000e-02 : f32
    %100 = vector.broadcast %cst_36 : f32 to vector<1x128xf32>
    %101 = arith.mulf %99, %100 : vector<1x128xf32>
    %cst_37 = arith.constant 9.99999974E-6 : f32
    %102 = vector.broadcast %cst_37 : f32 to vector<1x128xf32>
    %103 = arith.addf %101, %102 : vector<1x128xf32>
    %104 = math.rsqrt %103 : vector<1x128xf32>
    %105 = vector.broadcast %104 : vector<1x128xf32> to vector<32x128xf32>
    %106 = arith.mulf %96, %105 : vector<32x128xf32>
    %cst_38 = arith.constant 0.000000e+00 : f32
    %107 = vector.broadcast %cst_38 : f32 to vector<32x128xf32>
    %108 = arith.maximumf %106, %107 : vector<32x128xf32>
    %c1_i32_39 = arith.constant 1 : i32
    %109 = tpu.dynamic_rotate %108 by %c1_i32_39 dim 0 : vector<32x128xf32>, i32 -> vector<32x128xf32>
    %c1_i32_40 = arith.constant 1 : i32
    %110 = vector.broadcast %c1_i32_40 : i32 to vector<32x128xi32>
    %111 = arith.cmpi sge, %56, %110 : vector<32x128xi32>
    %cst_41 = arith.constant 0.000000e+00 : f32
    %112 = vector.broadcast %cst_41 : f32 to vector<32x128xf32>
    %113 = arith.select %111, %109, %112 : vector<32x128xi1>, vector<32x128xf32>
    %c32_i32_42 = arith.constant 32 : i32
    %114 = tpu.dynamic_rotate %113 by %c32_i32_42 dim 1 : vector<32x128xf32>, i32 -> vector<32x128xf32>
    %115 = arith.addf %108, %114 : vector<32x128xf32>
    %c2_i32_43 = arith.constant 2 : i32
    %116 = tpu.dynamic_rotate %108 by %c2_i32_43 dim 0 : vector<32x128xf32>, i32 -> vector<32x128xf32>
    %c2_i32_44 = arith.constant 2 : i32
    %117 = vector.broadcast %c2_i32_44 : i32 to vector<32x128xi32>
    %118 = arith.cmpi sge, %56, %117 : vector<32x128xi32>
    %cst_45 = arith.constant 0.000000e+00 : f32
    %119 = vector.broadcast %cst_45 : f32 to vector<32x128xf32>
    %120 = arith.select %118, %116, %119 : vector<32x128xi1>, vector<32x128xf32>
    %c64_i32_46 = arith.constant 64 : i32
    %121 = tpu.dynamic_rotate %120 by %c64_i32_46 dim 1 : vector<32x128xf32>, i32 -> vector<32x128xf32>
    %122 = arith.addf %115, %121 : vector<32x128xf32>
    %123 = arith.truncf %122 : vector<32x128xf32> to vector<32x128xbf16>
    %c0_47 = arith.constant 0 : index
    %c0_48 = arith.constant 0 : index
    %124 = vector.load %arg5[%c0_47, %c0_48] : memref<128x256xbf16, #tpu.memory_space<vmem>>, vector<128x256xbf16>
    %cst_49 = arith.constant dense<0.000000e+00> : vector<32x256xf32>
    %125 = tpu.matmul %123, %124, %cst_49 {dimension_numbers = #tpu.dot_dimension_numbers<[1], [0], [0], [1], [0, 0, 1, 1], [], []>} : vector<32x128xbf16>, vector<128x256xbf16>, vector<32x256xf32> -> vector<32x256xf32>
    %c0_50 = arith.constant 0 : index
    %c0_51 = arith.constant 0 : index
    %126 = vector.load %arg6[%c0_50, %c0_51] : memref<1x256xf32, #tpu.memory_space<vmem>>, vector<1x256xf32>
    %127 = vector.broadcast %126 : vector<1x256xf32> to vector<32x256xf32>
    %128 = arith.addf %125, %127 : vector<32x256xf32>
    %129 = vector.extract_strided_slice %128 {offsets = [0, 0], sizes = [32, 128], strides = [1, 1]} : vector<32x256xf32> to vector<32x128xf32>
    %130 = vector.extract_strided_slice %128 {offsets = [0, 128], sizes = [32, 128], strides = [1, 1]} : vector<32x256xf32> to vector<32x128xf32>
    %cst_52 = arith.constant 5.000000e-01 : f32
    %131 = vector.broadcast %cst_52 : f32 to vector<32x128xf32>
    %132 = arith.mulf %131, %130 : vector<32x128xf32>
    %133 = math.tanh %132 : vector<32x128xf32>
    %cst_53 = arith.constant 5.000000e-01 : f32
    %134 = vector.broadcast %cst_53 : f32 to vector<32x128xf32>
    %135 = arith.mulf %134, %133 : vector<32x128xf32>
    %cst_54 = arith.constant 5.000000e-01 : f32
    %136 = vector.broadcast %cst_54 : f32 to vector<32x128xf32>
    %137 = arith.addf %135, %136 : vector<32x128xf32>
    %138 = arith.mulf %129, %137 : vector<32x128xf32>
    %cst_55 = arith.constant 1.000000e+00 : f32
    %139 = vector.broadcast %cst_55 : f32 to vector<32x128xf32>
    %140 = arith.subf %139, %137 : vector<32x128xf32>
    %141 = arith.mulf %108, %140 : vector<32x128xf32>
    %142 = arith.addf %138, %141 : vector<32x128xf32>
    %cst_56 = arith.constant dense<0.000000e+00> : vector<128xf32>
    %143 = vector.multi_reduction <add>, %142, %cst_56 [0] : vector<32x128xf32> to vector<128xf32>
    %144 = vector.shape_cast %143 : vector<128xf32> to vector<1x128xf32>
    %cst_57 = arith.constant 3.125000e-02 : f32
    %145 = vector.broadcast %cst_57 : f32 to vector<1x128xf32>
    %146 = arith.mulf %144, %145 : vector<1x128xf32>
    %147 = vector.broadcast %146 : vector<1x128xf32> to vector<32x128xf32>
    %148 = arith.subf %142, %147 : vector<32x128xf32>
    %149 = arith.mulf %148, %148 : vector<32x128xf32>
    %cst_58 = arith.constant dense<0.000000e+00> : vector<128xf32>
    %150 = vector.multi_reduction <add>, %149, %cst_58 [0] : vector<32x128xf32> to vector<128xf32>
    %151 = vector.shape_cast %150 : vector<128xf32> to vector<1x128xf32>
    %cst_59 = arith.constant 3.125000e-02 : f32
    %152 = vector.broadcast %cst_59 : f32 to vector<1x128xf32>
    %153 = arith.mulf %151, %152 : vector<1x128xf32>
    %cst_60 = arith.constant 9.99999974E-6 : f32
    %154 = vector.broadcast %cst_60 : f32 to vector<1x128xf32>
    %155 = arith.addf %153, %154 : vector<1x128xf32>
    %156 = math.rsqrt %155 : vector<1x128xf32>
    %157 = vector.broadcast %156 : vector<1x128xf32> to vector<32x128xf32>
    %158 = arith.mulf %148, %157 : vector<32x128xf32>
    %cst_61 = arith.constant 0.000000e+00 : f32
    %159 = vector.broadcast %cst_61 : f32 to vector<32x128xf32>
    %160 = arith.maximumf %158, %159 : vector<32x128xf32>
    %161 = arith.truncf %160 : vector<32x128xf32> to vector<32x128xbf16>
    %c0_62 = arith.constant 0 : index
    %c0_63 = arith.constant 0 : index
    %162 = vector.load %arg7[%c0_62, %c0_63] : memref<128x128xbf16, #tpu.memory_space<vmem>>, vector<128x128xbf16>
    %cst_64 = arith.constant dense<0.000000e+00> : vector<32x128xf32>
    %163 = tpu.matmul %161, %162, %cst_64 {dimension_numbers = #tpu.dot_dimension_numbers<[1], [0], [0], [1], [0, 0, 1, 1], [], []>} : vector<32x128xbf16>, vector<128x128xbf16>, vector<32x128xf32> -> vector<32x128xf32>
    %c0_65 = arith.constant 0 : index
    %c0_66 = arith.constant 0 : index
    %164 = vector.load %arg8[%c0_65, %c0_66] : memref<1x128xf32, #tpu.memory_space<vmem>>, vector<1x128xf32>
    %165 = vector.broadcast %164 : vector<1x128xf32> to vector<32x128xf32>
    %166 = arith.addf %163, %165 : vector<32x128xf32>
    %167 = vector.shape_cast %166 : vector<32x128xf32> to vector<2x16x128xf32>
    %c0_67 = arith.constant 0 : index
    %c0_68 = arith.constant 0 : index
    %c0_69 = arith.constant 0 : index
    %168 = vector.load %arg9[%c0_67, %c0_68, %c0_69] : memref<2x16x128xf32, #tpu.memory_space<vmem>>, vector<2x16x128xf32>
    tpu.vector_store %arg9[%c0_67, %c0_68, %c0_69], %167 {strides = array<i32>} : memref<2x16x128xf32, #tpu.memory_space<vmem>>, vector<2x16x128xf32>,
    return
  }
}

</mosaic_0001>

<bundles_post_ra>
// kernel: tpu_custom_call.1
= control target key start
LH: loop header
LB: loop body
LE: loop exit
PB: predicated region body
PF: predicated region fallthrough
CT: control target
= control target key end

     0   :  { %14 = vsyncpa [#allocation3], 0  ;;  %s1886_s0 = inlined_call_operand.hbm [shape: bf16[2,16,128], index: 0, kind: input, shape index: {}]   ;;  %s1887_s1 = inlined_call_operand.hbm [shape: bf16[128,384], index: 1, kind: input, shape index: {}]   ;;  %s1888_s2 = inlined_call_operand.vmem [shape: f32[1,384], index: 2, kind: input, shape index: {}]   ;;  %s1889_s3 = inlined_call_operand.hbm [shape: bf16[128,256], index: 3, kind: input, shape index: {}]   ;;  %s1890_s4 = inlined_call_operand.vmem [shape: f32[1,256], index: 4, kind: input, shape index: {}]   ;;  %s1891_s5 = inlined_call_operand.hbm [shape: bf16[128,256], index: 5, kind: input, shape index: {}]   ;;  %s1892_s6 = inlined_call_operand.vmem [shape: f32[1,256], index: 6, kind: input, shape index: {}]   ;;  %s1893_s7 = inlined_call_operand.hbm [shape: bf16[128,128], index: 7, kind: input, shape index: {}]   ;;  %s1894_s8 = inlined_call_operand.vmem [shape: f32[1,128], index: 8, kind: input, shape index: {}]   ;;  %s1895_s9 = inlined_call_operand.hbm [shape: f32[2,16,128], index: 9, kind: output, shape index: {}]  }
   0x1   :  { %15 = vsyncpa [#allocation6], 0 }
   0x2   :  { %16 = vsyncpa [#allocation9], 0 }
   0x3   :  { %17 = vsyncpa [#allocation4], 0  ;;  %s1626_s30 = smov [#allocation5]  }
   0x4   :  { %s35_s10 = sshll.u32 %s1626_s30, 4  ;;  %s36_s10 = int_to_ptr.vmem [resolvable:$true] %s35_s10 }
   0x5   :  { %s1506_s11 = scalar_lea.vmem %s36_s10, 3072  ;;  %p1511_p1 = scmp.lt.s32.totalorder %s36_s10, %s36_s10 }
   0x6   :  { %p1507_p0 = scmp.ne.s32.totalorder %s36_s10, %s1506_s11  ;;  %p1512_p2 = scmp.lt.s32.totalorder %s1506_s11, %s1506_s11 }
   0x8   :  { %p1513_p3 = por %p1512_p2, %p1511_p1 }
   0xa   :  { %p1514_p4 = pnand %p1513_p3, %p1507_p0 }
   0xc   :  { %1517 = shalt.err (!%p1514_p4)
}
   0xd   :  { %s1627_s12 = smov 192   ;;  %s1628_s13 = smov 12  }
   0xe   :  { %41 = dma.hbm_to_vmem [thread:$0]  %s1887_s1, 3072, %s36_s10, [#allocation6], %s1627_s12, %s1627_s12, %s1628_s13  }
   0xf   :  { %s1629_s16 = smov [#allocation8]   ;;  %s1630_s18 = smov [#allocation2]  }
  0x10   :  { %s63_s17 = sshll.u32 %s1629_s16, 4  ;;  %s23_s19 = sshll.u32 %s1630_s18, 4  ;;  %s64_s17 = int_to_ptr.vmem [resolvable:$true] %s63_s17  ;;  %s24_s19 = int_to_ptr.vmem [resolvable:$true] %s23_s19 }
  0x11   :  { %s1526_s20 = scalar_lea.vmem %s64_s17, 2048  ;;  %p1531_p6 = scmp.lt.s32.totalorder %s64_s17, %s64_s17 }
  0x12   :  { %p1527_p5 = scmp.ne.s32.totalorder %s64_s17, %s1526_s20  ;;  %p1532_p7 = scmp.lt.s32.totalorder %s1526_s20, %s1526_s20 }
  0x14   :  { %p1533_p8 = por %p1532_p7, %p1531_p6 }
  0x16   :  { %p1534_p9 = pnand %p1533_p8, %p1527_p5 }
  0x18   :  { %1537 = shalt.err (!%p1534_p9)
}
  0x19   :  { %s1631_s21 = smov 128   ;;  %s1632_s22 = smov 8  }
  0x1a   :  { %69 = dma.hbm_to_vmem [thread:$0]  %s1891_s5, 2048, %s64_s17, [#allocation9], %s1631_s21, %s1631_s21, %s1632_s22  }
  0x1b   :  { %s1546_s1 = scalar_lea.vmem %s24_s19, 256  ;;  %p1551_p11 = scmp.lt.s32.totalorder %s24_s19, %s24_s19 }
  0x1c   :  { %p1547_p10 = scmp.ne.s32.totalorder %s24_s19, %s1546_s1  ;;  %p1552_p12 = scmp.lt.s32.totalorder %s1546_s1, %s1546_s1 }
  0x1e   :  { %p1553_p13 = por %p1552_p12, %p1551_p11 }
  0x20   :  { %p1554_p0 = pnand %p1553_p13, %p1547_p10 }
  0x22   :  { %1557 = shalt.err (!%p1554_p0)
}
  0x23   :  { %s1633_s25 = smov 64   ;;  %s1634_s26 = smov 4  }
  0x24   :  { %29 = dma.hbm_to_vmem [thread:$0]  %s1886_s0, 256, %s24_s19, [#allocation3], %s1633_s25, %s1633_s25, %s1634_s26  }
  0x25   :  { %s1635_s29 = smov [#allocation7]   ;;  %s1636_s5 = smov [#allocation10]  }
  0x26   :  { %s49_s30 = sshll.u32 %s1635_s29, 4  ;;  %s77_s10 = sshll.u32 %s1636_s5, 4  ;;  %s50_s30 = int_to_ptr.vmem [resolvable:$true] %s49_s30  ;;  %s78_s10 = int_to_ptr.vmem [resolvable:$true] %s77_s10 }
  0x27   :  { %s1566_s11 = scalar_lea.vmem %s50_s30, 2048  ;;  %p1571_p2 = scmp.lt.s32.totalorder %s50_s30, %s50_s30 }
  0x28   :  { %p1567_p1 = scmp.ne.s32.totalorder %s50_s30, %s1566_s11  ;;  %p1572_p3 = scmp.lt.s32.totalorder %s1566_s11, %s1566_s11 }
  0x2a   :  { %p1573_p4 = por %p1572_p3, %p1571_p2 }
  0x2c   :  { %p1574_p5 = pnand %p1573_p4, %p1567_p1 }
  0x2e   :  { %1577 = shalt.err (!%p1574_p5)
}
  0x2f   :  { %55 = dma.hbm_to_vmem [thread:$0]  %s1889_s3, 2048, %s50_s30, [#allocation6], %s1631_s21, %s1631_s21, %s1632_s22  }
  0x30   :  { %s1586_s0 = scalar_lea.vmem %s78_s10, 1024  ;;  %p1591_p7 = scmp.lt.s32.totalorder %s78_s10, %s78_s10 }
  0x31   :  { %p1587_p6 = scmp.ne.s32.totalorder %s78_s10, %s1586_s0  ;;  %p1592_p8 = scmp.lt.s32.totalorder %s1586_s0, %s1586_s0 }
  0x33   :  { %p1593_p9 = por %p1592_p8, %p1591_p7 }
  0x35   :  { %p1594_p10 = pnand %p1593_p9, %p1587_p6 }
  0x37   :  { %1597 = shalt.err (!%p1594_p10)
}
  0x38   :  { %83 = dma.hbm_to_vmem [thread:$0]  %s1893_s7, 1024, %s78_s10, [#allocation9], %s1633_s25, %s1633_s25, %s1634_s26  }
  0x39   :  { %1618 = dma.done.wait [#allocation3], 256  }
  0x3a   :  { %1619 = vsyncadd [#allocation3], 4294967040 }
  0x3b   :  { %1620 = dma.done.wait [#allocation6], 5120  }
  0x3c   :  { %1621 = vsyncadd [#allocation6], 4294962176 }
  0x3d   :  { %1622 = dma.done.wait [#allocation9], 3072  }
  0x3e   :  { %1623 = vsyncadd [#allocation9], 4294964224  ;;  %v1637_v0 = vmov 0   ;;  %v1378_v1 = vld [vmem:[#allocation5 + $0xac] ss:$12 sps:$4 sm:$0xff]   ;;  %v1405_v15 = vld [vmem:[#allocation2] sm:$0xff]   ;;  %v140_v27 = vlaneseq }
  0x3f   :  { %327 = vmatprep.mubr.bf16.mxu0 %v1637_v0  ;;  %v1380_v2 = vld [vmem:[#allocation5 + $0xa8] ss:$12 sps:$4 sm:$0xff]   ;;  %295 = vmatprep.subr.bf16.mxu0 %v1378_v1  ;;  %v1383_v4 = vld [vmem:[#allocation5 + $0x90] ss:$12 sps:$4 sm:$0xff]   ;;  %v1386_v6 = vld [vmem:[#allocation5 + $0x78] ss:$12 sps:$4 sm:$0xff]  }
  0x40   :  { %v1381_v3 = vld [vmem:[#allocation5 + $0x94] ss:$12 sps:$4 sm:$0xff]   ;;  %296 = vmatpush1.bf16.msra.mxu0 %v1380_v2  ;;  %v1384_v5 = vld [vmem:[#allocation5 + $0x7c] ss:$12 sps:$4 sm:$0xff]   ;;  %v1387_v7 = vld [vmem:[#allocation5 + $0x64] ss:$12 sps:$4 sm:$0xff]   ;;  %1340 = vmatprep.mubr.bf16.mxu1 %v1405_v15 }
  0x41   :  { %297 = vmatprep.subr.bf16.mxu0 %v1381_v3  ;;  %v1395_v8 = vld [vmem:[#allocation5 + $0xb0] ss:$12 sps:$4 sm:$0xff]   ;;  %v1399_v9 = vld [vmem:[#allocation5 + $0x98] ss:$12 sps:$4 sm:$0xff]   ;;  %v1389_v10 = vld [vmem:[#allocation5 + $0x60] ss:$12 sps:$4 sm:$0xff]  }
  0x42   :  { %1324 = vmatprep.subr.bf16.mxu1 %v1395_v8  ;;  %v1390_v11 = vld [vmem:[#allocation5 + $0x4c] ss:$12 sps:$4 sm:$0xff]   ;;  %v1392_v12 = vld [vmem:[#allocation5 + $0x48] ss:$12 sps:$4 sm:$0xff]   ;;  %v1396_v17 = vld [vmem:[#allocation5 + $0x30] ss:$12 sps:$4 sm:$0xff]  }
  0x43   :  { %1325 = vmatpush3.bf16.msra.mxu1 %v1395_v8  ;;  %v1403_v13 = vld [vmem:[#allocation5 + $0x80] ss:$12 sps:$4 sm:$0xff]   ;;  %v1406_v16 = vld [vmem:[#allocation5 + $0x68] ss:$12 sps:$4 sm:$0xff]   ;;  %v1407_v19 = vld [vmem:[#allocation5 + $0x50] ss:$12 sps:$4 sm:$0xff]  }
  0x44   :  { %298 = vmatpush1.bf16.msra.mxu0 %v1383_v4  ;;  %1326 = vmatprep.subr.bf16.mxu1 %v1399_v9  ;;  %v1393_v14 = vld [vmem:[#allocation5 + $0x34] ss:$12 sps:$4 sm:$0xff]   ;;  %v1397_v18 = vld [vmem:[#allocation5 + $0x1c] ss:$12 sps:$4 sm:$0xff]   ;;  %v1400_v20 = vld [vmem:[#allocation5 + $0x18] ss:$12 sps:$4 sm:$0xff]  }
  0x45   :  { %299 = vmatprep.subr.bf16.mxu0 %v1384_v5  ;;  %v1401_v21 = vld [vmem:[#allocation5 + $0x4] ss:$12 sps:$4 sm:$0xff]   ;;  %v1404_v23 = vld [vmem:[#allocation5] ss:$12 sps:$4 sm:$0xff]   ;;  %v1411_v25 = vld [vmem:[#allocation5 + $0x8] ss:$12 sps:$4 sm:$0xff]  }
  0x46   :  { %v1409_v22 = vld [vmem:[#allocation5 + $0x38] ss:$12 sps:$4 sm:$0xff]   ;;  %v1410_v24 = vld [vmem:[#allocation5 + $0x20] ss:$12 sps:$4 sm:$0xff]   ;;  %v1414_v29 = vld [vmem:[#allocation7 + $0x74] ss:$8 sps:$4 sm:$0xff]  }
  0x47   :  { %1327 = vmatpush3.bf16.msra.mxu1 %v1399_v9  ;;  %v1408_v26 = vld [vmem:[#allocation2 + $0x8] sm:$0xff]   ;;  %v1417_v30 = vld [vmem:[#allocation7 + $0x64] ss:$8 sps:$4 sm:$0xff]   ;;  %v1719_v31 = vshrl.u32 %v140_v27, 7  ;;  %v1415_v32 = vld [vmem:[#allocation7 + $0x60] ss:$8 sps:$4 sm:$0xff]  }
  0x48   :  { %300 = vmatpush1.bf16.msra.mxu0 %v1386_v6  ;;  %1328 = vmatprep.subr.bf16.mxu1 %v1403_v13  ;;  %v1412_v28 = vld [vmem:[#allocation7 + $0x70] ss:$8 sps:$4 sm:$0xff]   ;;  %v1420_v34 = vld [vmem:[#allocation7 + $0x54] ss:$8 sps:$4 sm:$0xff]   ;;  %v1423_v38 = vld [vmem:[#allocation7 + $0x44] ss:$8 sps:$4 sm:$0xff]  }
  0x49   :  { %301 = vmatprep.subr.bf16.mxu0 %v1387_v7  ;;  %v1722_v33 = vsub.s32 1, %v1719_v31  ;;  %v138_v35 = vld [vmem:[%s1888_s2] sm:$0x7]  ;;  %v1421_v41 = vld [vmem:[#allocation7 + $0x40] ss:$8 sps:$4 sm:$0xff]   ;;  %v150_v63 = vsub.s32 2, %v1719_v31 }
  0x4a   :  { %v1418_v36 = vld [vmem:[#allocation7 + $0x50] ss:$8 sps:$4 sm:$0xff]   ;;  %v1426_v43 = vld [vmem:[#allocation7 + $0x34] ss:$8 sps:$4 sm:$0xff]   ;;  %v1429_v49 = vld [vmem:[#allocation7 + $0x24] ss:$8 sps:$4 sm:$0xff]  }
  0x4b   :  { %1329 = vmatpush3.bf16.msra.mxu1 %v1403_v13  ;;  %v147_v37 = vrot.slane %v138_v35, %v1722_v33  ;;  %v1424_v47 = vld [vmem:[#allocation7 + $0x30] ss:$8 sps:$4 sm:$0xff]   ;;  %v1427_v53 = vld [vmem:[#allocation7 + $0x20] ss:$8 sps:$4 sm:$0xff]   ;;  %v1730_v4 = vsub.s32 0, %v1719_v31  ;;  %v151_v5 = vrot.slane %v138_v35, %v150_v63  ;;  %vm553_vm0 = vcmp.lt.s32.totalorder %v1719_v31, 2 }
  0x4c   :  { %302 = vmatpush1.bf16.msra.mxu0 %v1389_v10  ;;  %1330 = vmatprep.subr.bf16.mxu1 %v1406_v16  ;;  %vm524_vm1 = vcmp.lt.s32.totalorder %v1719_v31, 1  ;;  %s1638_s2 = smov 32   ;;  %s1639_s20 = smov [#allocation11]  }
  0x4d   :  { %303 = vmatprep.subr.bf16.mxu0 %v1390_v11  ;;  %v143_v11 = vrot.slane %v138_v35, %v1730_v4  ;;  %s1223_s23 = sshll.u32 %s1639_s20, 4  ;;  %s1224_s23 = int_to_ptr.vmem [resolvable:$true] %s1223_s23 }
  0x4e   :  { %s1598_s24 = scalar_lea.vmem %s1224_s23, 512  ;;  %p1603_p12 = scmp.lt.s32.totalorder %s1224_s23, %s1224_s23 }
  0x4f   :  { %1331 = vmatpush3.bf16.msra.mxu1 %v1406_v16  ;;  %p1599_p11 = scmp.ne.s32.totalorder %s1224_s23, %s1598_s24  ;;  %p1604_p13 = scmp.lt.s32.totalorder %s1598_s24, %s1598_s24 }
  0x50   :  { %304 = vmatpush1.bf16.msra.mxu0 %v1392_v12  ;;  %1332 = vmatprep.subr.bf16.mxu1 %v1407_v19 }
  0x51   :  { %305 = vmatprep.subr.bf16.mxu0 %v1393_v14  ;;  %p1605_p0 = por %p1604_p13, %p1603_p12 }
  0x53   :  { %1333 = vmatpush3.bf16.msra.mxu1 %v1407_v19  ;;  %p1606_p1 = pnand %p1605_p0, %p1599_p11 }
  0x54   :  { %306 = vmatpush1.bf16.msra.mxu0 %v1396_v17  ;;  %1334 = vmatprep.subr.bf16.mxu1 %v1409_v22 }
  0x55   :  { %307 = vmatprep.subr.bf16.mxu0 %v1397_v18 }
  0x57   :  { %1335 = vmatpush3.bf16.msra.mxu1 %v1409_v22 }
  0x58   :  { %308 = vmatpush1.bf16.msra.mxu0 %v1400_v20  ;;  %1336 = vmatprep.subr.bf16.mxu1 %v1410_v24 }
  0x59   :  { %309 = vmatprep.subr.bf16.mxu0 %v1401_v21 }
  0x5b   :  { %1337 = vmatpush3.bf16.msra.mxu1 %v1410_v24 }
  0x5c   :  { %310 = vmatpush1.bf16.msra.mxu0 %v1404_v23  ;;  %1338 = vmatprep.subr.bf16.mxu1 %v1411_v25 }
  0x5d   :  { %688 = vmatprep.subr.bf16.mxu0 %v1414_v29 }
  0x5f   :  { %328 = vmatmul.mubr.bf16.vlgmr.msra.gmra.mxu0 %v1405_v15  ;;  %1339 = vmatpush3.bf16.msra.mxu1 %v1411_v25 }
  0x60   :  { %337 = vmatprep.mubr.bf16.mxu0 %v1637_v0  ;;  %689 = vmatpush1.bf16.msra.mxu0 %v1412_v28 }
  0x61   :  { %690 = vmatprep.subr.bf16.mxu0 %v1417_v30 }
  0x62   :  { %1341 = vmatmul.mubr.bf16.vlgmr.msra.gmra.mxu1 %v1408_v26 }
  0x63   :  { %1001 = vmatprep.mubr.bf16.mxu1 %v1637_v0 }
  0x64   :  { %691 = vmatpush1.bf16.msra.mxu0 %v1415_v32 }
  0x65   :  { %692 = vmatprep.subr.bf16.mxu0 %v1420_v34 }
  0x67   :  { %338 = vmatmul.mubr.bf16.gmra.mxu0 %v1408_v26 }
  0x68   :  { %720 = vmatprep.mubr.bf16.mxu0 %v1637_v0  ;;  %693 = vmatpush1.bf16.msra.mxu0 %v1418_v36 }
  0x69   :  { %694 = vmatprep.subr.bf16.mxu0 %v1423_v38 }
  0x6c   :  { %695 = vmatpush1.bf16.msra.mxu0 %v1421_v41 }
  0x6d   :  { %696 = vmatprep.subr.bf16.mxu0 %v1426_v43 }
  0x70   :  { %697 = vmatpush1.bf16.msra.mxu0 %v1424_v47 }
  0x71   :  { %698 = vmatprep.subr.bf16.mxu0 %v1429_v49 }
  0x74   :  { %699 = vmatpush1.bf16.msra.mxu0 %v1427_v53 }
 0x11f   :  { %v329_v39 = vpop.f32.mrf.mxu0 }
 0x120   :  { %v330_v21 = vadd.f32 %v329_v39, %v143_v11 }
 0x121   :  { %v331_v40 = vpop.f32.mrf.mxu0 }
 0x122   :  { %v332_v42 = vadd.f32 %v331_v40, %v147_v37  ;;  %v1342_v58 = vpop.f32.mrf.mxu1 }
 0x123   :  { %v333_v44 = vpop.f32.mrf.mxu0  ;;  %v391_v23 = vadd.f32 %v1342_v58, %v151_v5 }
 0x124   :  { %v397_v45 = vmul.f32 0.5, %v332_v42  ;;  %v382_v61 = vpop.f32.mrf.mxu1  ;;  %v334_v17 = vadd.f32 %v333_v44, %v143_v11 }
 0x125   :  { %v335_v46 = vpop.f32.mrf.mxu0  ;;  %v383_v12 = vadd.f32 %v382_v61, %v151_v5 }
 0x126   :  { %1468 = vtanh.f32 %v397_v45  ;;  %v336_v48 = vadd.f32 %v335_v46, %v147_v37  ;;  %v1343_v2 = vpop.f32.mrf.mxu1 }
 0x127   :  { %v339_v50 = vpop.f32.mrf.mxu0  ;;  %v394_v38 = vadd.f32 %v1343_v2, %v151_v5 }
 0x128   :  { %v398_v51 = vmul.f32 0.5, %v336_v48  ;;  %v385_v8 = vpop.f32.mrf.mxu1  ;;  %v340_v22 = vadd.f32 %v339_v50, %v143_v11 }
 0x129   :  { %v341_v52 = vpop.f32.mrf.mxu0  ;;  %v386_v15 = vadd.f32 %v385_v8, %v151_v5 }
 0x12a   :  { %1470 = vtanh.f32 %v398_v51  ;;  %v342_v54 = vadd.f32 %v341_v52, %v147_v37 }
 0x12b   :  { %v343_v55 = vpop.f32.mrf.mxu0 }
 0x12c   :  { %v399_v56 = vmul.f32 0.5, %v342_v54  ;;  %v344_v35 = vadd.f32 %v343_v55, %v143_v11  ;;  %v1432_v11 = vld [vmem:[#allocation7 + $0x14] ss:$8 sps:$4 sm:$0xff]  }
 0x12d   :  { %v345_v57 = vpop.f32.mrf.mxu0  ;;  %700 = vmatprep.subr.bf16.mxu0 %v1432_v11  ;;  %v1439_v11 = vld [vmem:[#allocation8 + $0x60] ss:$8 sps:$4 sm:$0xff]  }
 0x12e   :  { %1472 = vtanh.f32 %v399_v56  ;;  %v346_v59 = vadd.f32 %v345_v57, %v147_v37 }
 0x130   :  { %v400_v60 = vmul.f32 0.5, %v346_v59 }
 0x132   :  { %1474 = vtanh.f32 %v400_v60 }
 0x133   :  { %v1469_v62 = vpop.eup %1468 }
 0x134   :  { %v405_v1 = vmul.f32 0.5, %v1469_v62 }
 0x136   :  { %v409_v6 = vadd.f32 0.5, %v405_v1 }
 0x137   :  { %v1471_v3 = vpop.eup %1470 }
 0x138   :  { %v406_v7 = vmul.f32 0.5, %v1471_v3  ;;  %v417_v14 = vsub.f32 1.0, %v409_v6  ;;  %v413_v28 = vmul.f32 %v409_v6, %v330_v21 }
 0x13a   :  { %v410_v9 = vadd.f32 0.5, %v406_v7  ;;  %v421_v26 = vmul.f32 %v417_v14, %v383_v12 }
 0x13b   :  { %v1473_v10 = vpop.eup %1472 }
 0x13c   :  { %v407_v13 = vmul.f32 0.5, %v1473_v10  ;;  %v418_v16 = vsub.f32 1.0, %v410_v9  ;;  %v414_v27 = vmul.f32 %v410_v9, %v334_v17  ;;  %v425_v37 = vadd.f32 %v421_v26, %v413_v28  ;;  %v1430_v10 = vld [vmem:[#allocation7 + $0x10] ss:$8 sps:$4 sm:$0xff]  }
 0x13d   :  { %701 = vmatpush1.bf16.msra.mxu0 %v1430_v10  ;;  %v1441_v10 = vld [vmem:[#allocation8 + $0x64] ss:$8 sps:$4 sm:$0xff]  }
 0x13e   :  { %v411_v18 = vadd.f32 0.5, %v407_v13  ;;  %v422_v19 = vmul.f32 %v418_v16, %v386_v15  ;;  %v476_v13 = vand.u32 15, %v1719_v31 }
 0x13f   :  { %v1475_v20 = vpop.eup %1474 }
 0x140   :  { %v408_v24 = vmul.f32 0.5, %v1475_v20  ;;  %v419_v25 = vsub.f32 1.0, %v411_v18  ;;  %v415_v30 = vmul.f32 %v411_v18, %v340_v22  ;;  %v426_v34 = vadd.f32 %v422_v19, %v414_v27  ;;  %v1435_v18 = vld [vmem:[#allocation7 + $0x4] ss:$8 sps:$4 sm:$0xff]  }
 0x141   :  { %v470_v22 = vadd.s32 16, %v1719_v31  ;;  %vm1743_vm2 = vcmp.ge.s32.totalorder %v476_v13, 1  ;;  %702 = vmatprep.subr.bf16.mxu0 %v1435_v18  ;;  %vm1763_vm3 = vcmp.ge.s32.totalorder %v476_v13, 2  ;;  %v596_v13 = vld [vmem:[%s1890_s4] sm:$0x3] }
 0x142   :  { %v412_v29 = vadd.f32 0.5, %v408_v24  ;;  %v423_v32 = vmul.f32 %v419_v25, %v391_v23  ;;  %v429_v43 = vadd.f32 %v426_v34, %v425_v37  ;;  %v1433_v23 = vld [vmem:[#allocation7] ss:$8 sps:$4 sm:$0xff]  }
 0x143   :  { %703 = vmatpush1.bf16.msra.mxu0 %v1433_v23 }
 0x144   :  { %v427_v36 = vadd.f32 %v423_v32, %v415_v30  ;;  %v420_v40 = vsub.f32 1.0, %v412_v29  ;;  %v416_v41 = vmul.f32 %v412_v29, %v344_v35 }
 0x146   :  { %v424_v42 = vmul.f32 %v420_v40, %v394_v38  ;;  %v430_v44 = vadd.f32 %v429_v43, %v427_v36 }
 0x148   :  { %v428_v39 = vadd.f32 %v424_v42, %v416_v41  ;;  %v490_v41 = vand.u32 15, %v470_v22  ;;  %v1445_v22 = vld [vmem:[#allocation8 + $0x40] ss:$8 sps:$4 sm:$0xff]  }
 0x14a   :  { %v431_v45 = vadd.f32 %v430_v44, %v428_v39  ;;  %vm1778_vm4 = vcmp.ge.s32.totalorder %v490_v41, 1  ;;  %vm1791_vm5 = vcmp.ge.s32.totalorder %v490_v41, 2 }
 0x14c   :  { %v432_v46 = vrot.slane %v431_v45, 4 }
 0x14e   :  { %v433_v47 = vadd.f32 %v432_v46, %v431_v45 }
 0x150   :  { %v434_v48 = vrot.slane %v433_v47, 2 }
 0x152   :  { %v435_v49 = vadd.f32 %v434_v48, %v433_v47 }
 0x154   :  { %v436_v50 = vrot.slane %v435_v49, 1 }
 0x156   :  { %v437_v51 = vadd.f32 %v436_v50, %v435_v49 }
 0x158   :  { %v438_v52 = vmul.f32 0.03125, %v437_v51 }
 0x15a   :  { %v439_v53 = vsub.f32 %v425_v37, %v438_v52  ;;  %v440_v54 = vsub.f32 %v426_v34, %v438_v52  ;;  %v441_v55 = vsub.f32 %v427_v36, %v438_v52  ;;  %v442_v56 = vsub.f32 %v428_v39, %v438_v52 }
 0x15c   :  { %v443_v57 = vmul.f32 %v439_v53, %v439_v53  ;;  %v444_v58 = vmul.f32 %v440_v54, %v440_v54  ;;  %v445_v59 = vmul.f32 %v441_v55, %v441_v55  ;;  %v446_v61 = vmul.f32 %v442_v56, %v442_v56 }
 0x15e   :  { %v447_v60 = vadd.f32 %v444_v58, %v443_v57 }
 0x160   :  { %v448_v62 = vadd.f32 %v447_v60, %v445_v59 }
 0x162   :  { %v449_v63 = vadd.f32 %v448_v62, %v446_v61 }
 0x164   :  { %v450_v1 = vrot.slane %v449_v63, 4 }
 0x166   :  { %v451_v2 = vadd.f32 %v450_v1, %v449_v63 }
 0x168   :  { %v452_v3 = vrot.slane %v451_v2, 2 }
 0x16a   :  { %v453_v5 = vadd.f32 %v452_v3, %v451_v2 }
 0x16c   :  { %v454_v6 = vrot.slane %v453_v5, 1 }
 0x16e   :  { %v455_v7 = vadd.f32 %v454_v6, %v453_v5 }
 0x170   :  { %v456_v8 = vmul.f32 0.03125, %v455_v7 }
 0x172   :  { %v457_v9 = vadd.f32 1e-05, %v456_v8  ;;  %v1436_v8 = vld [vmem:[#allocation8 + $0x70] ss:$8 sps:$4 sm:$0xff]  }
 0x174   :  { %1476 = vrsqrt.f32 %v457_v9  ;;  %v1438_v9 = vld [vmem:[#allocation8 + $0x74] ss:$8 sps:$4 sm:$0xff]  }
 0x175   :  { %969 = vmatprep.subr.bf16.mxu1 %v1438_v9 }
 0x176   :  { %970 = vmatpush1.bf16.msra.mxu1 %v1436_v8 }
 0x177   :  { %971 = vmatprep.subr.bf16.mxu1 %v1441_v10 }
 0x17a   :  { %972 = vmatpush1.bf16.msra.mxu1 %v1439_v11 }
 0x181   :  { %v1477_v12 = vpop.eup %1476 }
 0x182   :  { %v460_v14 = vmul.f32 %v1477_v12, %v440_v54  ;;  %v459_v15 = vmul.f32 %v1477_v12, %v439_v53  ;;  %v462_v16 = vmul.f32 %v1477_v12, %v442_v56  ;;  %v461_v17 = vmul.f32 %v1477_v12, %v441_v55  ;;  %v1444_v12 = vld [vmem:[#allocation8 + $0x54] ss:$8 sps:$4 sm:$0xff]  }
 0x183   :  { %973 = vmatprep.subr.bf16.mxu1 %v1444_v12 }
 0x184   :  { %v1734_v19 = vmax.f32 %v460_v14, 0.0  ;;  %v1736_v20 = vmax.f32 %v459_v15, 0.0  ;;  %v1738_v21 = vmax.f32 %v462_v16, 0.0  ;;  %v1747_v25 = vmax.f32 %v461_v17, 0.0  ;;  %v1442_v14 = vld [vmem:[#allocation8 + $0x50] ss:$8 sps:$4 sm:$0xff]  }
 0x185   :  { %v605_v15 = vrot.slane %v596_v13, %v1722_v33  ;;  %v1447_v16 = vld [vmem:[#allocation8 + $0x44] ss:$8 sps:$4 sm:$0xff]   ;;  %974 = vmatpush1.bf16.msra.mxu1 %v1442_v14 }
 0x186   :  { %v549_v26 = vrot.slane %v1736_v20, 6  ;;  %v550_v27 = vrot.slane %v1734_v19, 6  ;;  %v520_v28 = vrot.slane %v1736_v20, 7  ;;  %v523_v29 = vrot.slane %v1738_v21, 7  ;;  %975 = vmatprep.subr.bf16.mxu1 %v1447_v16 }
 0x187   :  { %v552_v30 = vrot.slane %v1738_v21, 6  ;;  %v521_v38 = vrot.slane %v1734_v19, 7  ;;  %v522_v40 = vrot.slane %v1747_v25, 7  ;;  %v551_v45 = vrot.slane %v1747_v25, 6 }
 0x188   :  { %v556_v32 = vsel %vm553_vm0, %v549_v26, %v550_v27  ;;  %v528_v34 = vsel %vm524_vm1, %v523_v29, %v520_v28 }
 0x189   :  { %568 = vrot.lane.b32.xlu1 %v556_v32, %s1633_s25  ;;  %v533_v35 = vsel %vm1743_vm2, %v528_v34, 0.0  ;;  %v557_v36 = vsel %vm553_vm0, %v552_v30, %v549_v26  ;;  %v527_v43 = vsel %vm524_vm1, %v520_v28, %v521_v38  ;;  %v526_v39 = vsel %vm524_vm1, %v521_v38, %v522_v40  ;;  %v1450_v26 = vld [vmem:[#allocation8 + $0x34] ss:$8 sps:$4 sm:$0xff]   ;;  %976 = vmatpush1.bf16.msra.mxu1 %v1445_v22  ;;  %v1453_v34 = vld [vmem:[#allocation8 + $0x24] ss:$8 sps:$4 sm:$0xff]  }
 0x18a   :  { %537 = vrot.lane.b32.xlu0 %v533_v35, %s1638_s2  ;;  %v562_v42 = vsel %vm1763_vm3, %v557_v36, 0.0  ;;  %v525_v46 = vsel %vm524_vm1, %v522_v40, %v523_v29  ;;  %v535_v47 = vsel %vm1778_vm4, %v526_v39, 0.0  ;;  %v555_v48 = vsel %vm553_vm0, %v550_v27, %v551_v45  ;;  %977 = vmatprep.subr.bf16.mxu1 %v1450_v26  ;;  %v1451_v40 = vld [vmem:[#allocation8 + $0x20] ss:$8 sps:$4 sm:$0xff]  }
 0x18b   :  { %v554_v50 = vsel %vm553_vm0, %v551_v45, %v552_v30  ;;  %v564_v51 = vsel %vm1791_vm5, %v555_v48, 0.0  ;;  %v1448_v30 = vld [vmem:[#allocation8 + $0x30] ss:$8 sps:$4 sm:$0xff]  }
 0x18d   :  { %566 = vrot.lane.b32.xlu1 %v562_v42, %s1633_s25  ;;  %978 = vmatpush1.bf16.msra.mxu1 %v1448_v30 }
 0x18e   :  { %539 = vrot.lane.b32.xlu0 %v527_v43, %s1638_s2  ;;  %979 = vmatprep.subr.bf16.mxu1 %v1453_v34 }
 0x191   :  { %543 = vrot.lane.b32.xlu1 %v525_v46, %s1638_s2  ;;  %980 = vmatpush1.bf16.msra.mxu1 %v1451_v40 }
 0x192   :  { %541 = vrot.lane.b32.xlu0 %v535_v47, %s1638_s2 }
 0x195   :  { %572 = vrot.lane.b32.xlu1 %v554_v50, %s1633_s25 }
 0x196   :  { %570 = vrot.lane.b32.xlu0 %v564_v51, %s1633_s25 }
 0x1fb   :  { %v569_v52 = vpop.permute.xlu1 %568 }
 0x1fc   :  { %v538_v53 = vpop.permute.xlu0 %537 }
 0x1fd   :  { %v545_v54 = vadd.f32 %v538_v53, %v1736_v20 }
 0x1ff   :  { %v567_v55 = vpop.permute.xlu1 %566 }
 0x200   :  { %v540_v56 = vpop.permute.xlu0 %539  ;;  %v574_v58 = vadd.f32 %v567_v55, %v545_v54  ;;  %v601_v55 = vrot.slane %v596_v13, %v1730_v4 }
 0x201   :  { %v546_v57 = vadd.f32 %v540_v56, %v1734_v19 }
 0x203   :  { %v575_v59 = vadd.f32 %v569_v52, %v546_v57  ;;  %v544_v60 = vpop.permute.xlu1 %543 }
 0x204   :  { %v542_v61 = vpop.permute.xlu0 %541  ;;  %v548_v63 = vadd.f32 %v544_v60, %v1738_v21 }
 0x205   :  { %v578_v62 = vpack.c.bf16 %v575_v59, %v574_v58  ;;  %v547_v1 = vadd.f32 %v542_v61, %v1747_v25 }
 0x207   :  { %v573_v2 = vpop.permute.xlu1 %572  ;;  %721 = vmatmul.mubr.bf16.vlgmr.msra.gmra.mxu0 %v578_v62 }
 0x208   :  { %v571_v3 = vpop.permute.xlu0 %570  ;;  %730 = vmatprep.mubr.bf16.mxu0 %v1637_v0  ;;  %v577_v5 = vadd.f32 %v573_v2, %v548_v63 }
 0x209   :  { %v576_v6 = vadd.f32 %v571_v3, %v547_v1 }
 0x20b   :  { %v579_v7 = vpack.c.bf16 %v577_v5, %v576_v6 }
 0x20f   :  { %731 = vmatmul.mubr.bf16.gmra.mxu0 %v579_v7 }
 0x2c7   :  { %v722_v17 = vpop.f32.mrf.mxu0 }
 0x2c8   :  { %v723_v63 = vadd.f32 %v722_v17, %v601_v55 }
 0x2c9   :  { %v724_v18 = vpop.f32.mrf.mxu0 }
 0x2ca   :  { %v725_v23 = vadd.f32 %v724_v18, %v605_v15 }
 0x2cb   :  { %v726_v27 = vpop.f32.mrf.mxu0 }
 0x2cc   :  { %v741_v28 = vmul.f32 0.5, %v725_v23  ;;  %v727_v59 = vadd.f32 %v726_v27, %v601_v55 }
 0x2cd   :  { %v728_v29 = vpop.f32.mrf.mxu0 }
 0x2ce   :  { %1478 = vtanh.f32 %v741_v28  ;;  %v729_v32 = vadd.f32 %v728_v29, %v605_v15 }
 0x2cf   :  { %v732_v35 = vpop.f32.mrf.mxu0 }
 0x2d0   :  { %v742_v36 = vmul.f32 0.5, %v729_v32  ;;  %v733_v1 = vadd.f32 %v732_v35, %v601_v55 }
 0x2d1   :  { %v734_v38 = vpop.f32.mrf.mxu0 }
 0x2d2   :  { %1480 = vtanh.f32 %v742_v36  ;;  %v735_v41 = vadd.f32 %v734_v38, %v605_v15 }
 0x2d3   :  { %v736_v42 = vpop.f32.mrf.mxu0 }
 0x2d4   :  { %v743_v43 = vmul.f32 0.5, %v735_v41  ;;  %v737_v14 = vadd.f32 %v736_v42, %v601_v55  ;;  %v1456_v55 = vld [vmem:[#allocation8 + $0x14] ss:$8 sps:$4 sm:$0xff]  }
 0x2d5   :  { %v738_v39 = vpop.f32.mrf.mxu0  ;;  %981 = vmatprep.subr.bf16.mxu1 %v1456_v55 }
 0x2d6   :  { %1482 = vtanh.f32 %v743_v43  ;;  %v739_v45 = vadd.f32 %v738_v39, %v605_v15 }
 0x2d8   :  { %v744_v46 = vmul.f32 0.5, %v739_v45 }
 0x2da   :  { %1484 = vtanh.f32 %v744_v46 }
 0x2db   :  { %v1479_v47 = vpop.eup %1478 }
 0x2dc   :  { %v749_v48 = vmul.f32 0.5, %v1479_v47 }
 0x2de   :  { %v753_v51 = vadd.f32 0.5, %v749_v48 }
 0x2df   :  { %v1481_v50 = vpop.eup %1480 }
 0x2e0   :  { %v750_v52 = vmul.f32 0.5, %v1481_v50  ;;  %v761_v56 = vsub.f32 1.0, %v753_v51  ;;  %v757_v7 = vmul.f32 %v753_v51, %v723_v63 }
 0x2e2   :  { %v754_v53 = vadd.f32 0.5, %v750_v52  ;;  %v765_v2 = vmul.f32 %v761_v56, %v1736_v20 }
 0x2e3   :  { %v1483_v54 = vpop.eup %1482 }
 0x2e4   :  { %v762_v57 = vsub.f32 1.0, %v754_v53  ;;  %v751_v58 = vmul.f32 0.5, %v1483_v54  ;;  %v758_v3 = vmul.f32 %v754_v53, %v727_v59  ;;  %v769_v12 = vadd.f32 %v765_v2, %v757_v7  ;;  %v1454_v54 = vld [vmem:[#allocation8 + $0x10] ss:$8 sps:$4 sm:$0xff]  }
 0x2e5   :  { %982 = vmatpush1.bf16.msra.mxu1 %v1454_v54 }
 0x2e6   :  { %v766_v60 = vmul.f32 %v762_v57, %v1734_v19  ;;  %v755_v61 = vadd.f32 0.5, %v751_v58  ;;  %v1459_v57 = vld [vmem:[#allocation8 + $0x4] ss:$8 sps:$4 sm:$0xff]  }
 0x2e7   :  { %v1485_v62 = vpop.eup %1484  ;;  %983 = vmatprep.subr.bf16.mxu1 %v1459_v57 }
 0x2e8   :  { %v763_v5 = vsub.f32 1.0, %v755_v61  ;;  %v752_v6 = vmul.f32 0.5, %v1485_v62  ;;  %v770_v8 = vadd.f32 %v766_v60, %v758_v3  ;;  %v759_v9 = vmul.f32 %v755_v61, %v733_v1  ;;  %v1457_v62 = vld [vmem:[#allocation8] ss:$8 sps:$4 sm:$0xff]  }
 0x2e9   :  { %984 = vmatpush1.bf16.msra.mxu1 %v1457_v62 }
 0x2ea   :  { %v767_v10 = vmul.f32 %v763_v5, %v1747_v25  ;;  %v756_v11 = vadd.f32 0.5, %v752_v6  ;;  %v773_v19 = vadd.f32 %v770_v8, %v769_v12 }
 0x2ec   :  { %v771_v13 = vadd.f32 %v767_v10, %v759_v9  ;;  %v764_v15 = vsub.f32 1.0, %v756_v11  ;;  %v760_v16 = vmul.f32 %v756_v11, %v737_v14 }
 0x2ee   :  { %v768_v17 = vmul.f32 %v764_v15, %v1738_v21  ;;  %v774_v18 = vadd.f32 %v773_v19, %v771_v13 }
 0x2f0   :  { %v772_v22 = vadd.f32 %v768_v17, %v760_v16 }
 0x2f2   :  { %v775_v20 = vadd.f32 %v774_v18, %v772_v22 }
 0x2f4   :  { %v776_v23 = vrot.slane %v775_v20, 4 }
 0x2f6   :  { %v777_v26 = vadd.f32 %v776_v23, %v775_v20 }
 0x2f8   :  { %v778_v27 = vrot.slane %v777_v26, 2 }
 0x2fa   :  { %v779_v28 = vadd.f32 %v778_v27, %v777_v26 }
 0x2fc   :  { %v780_v29 = vrot.slane %v779_v28, 1 }
 0x2fe   :  { %v781_v30 = vadd.f32 %v780_v29, %v779_v28 }
 0x300   :  { %v782_v32 = vmul.f32 0.03125, %v781_v30 }
 0x302   :  { %v783_v25 = vsub.f32 %v769_v12, %v782_v32  ;;  %v784_v34 = vsub.f32 %v770_v8, %v782_v32  ;;  %v785_v35 = vsub.f32 %v771_v13, %v782_v32  ;;  %v786_v36 = vsub.f32 %v772_v22, %v782_v32 }
 0x304   :  { %v787_v38 = vmul.f32 %v783_v25, %v783_v25  ;;  %v788_v40 = vmul.f32 %v784_v34, %v784_v34  ;;  %v789_v41 = vmul.f32 %v785_v35, %v785_v35  ;;  %v790_v43 = vmul.f32 %v786_v36, %v786_v36 }
 0x306   :  { %v791_v42 = vadd.f32 %v788_v40, %v787_v38 }
 0x308   :  { %v792_v21 = vadd.f32 %v791_v42, %v789_v41 }
 0x30a   :  { %v793_v39 = vadd.f32 %v792_v21, %v790_v43  ;;  %v1460_v21 = vld [vmem:[#allocation10 + $0x38] sm:$0xff]  }
 0x30b   :  { %1344 = vmatprep.subr.bf16.mxu0 %v1460_v21 }
 0x30c   :  { %v794_v45 = vrot.slane %v793_v39, 4  ;;  %1345 = vmatpush3.bf16.msra.mxu0 %v1460_v21 }
 0x30e   :  { %v795_v46 = vadd.f32 %v794_v45, %v793_v39  ;;  %v1461_v39 = vld [vmem:[#allocation10 + $0x30] sm:$0xff]   ;;  %v1462_v45 = vld [vmem:[#allocation10 + $0x28] sm:$0xff]  }
 0x30f   :  { %1346 = vmatprep.subr.bf16.mxu0 %v1461_v39 }
 0x310   :  { %v796_v47 = vrot.slane %v795_v46, 2  ;;  %1347 = vmatpush3.bf16.msra.mxu0 %v1461_v39 }
 0x311   :  { %1348 = vmatprep.subr.bf16.mxu0 %v1462_v45 }
 0x312   :  { %v797_v48 = vadd.f32 %v796_v47, %v795_v46  ;;  %v1463_v46 = vld [vmem:[#allocation10 + $0x20] sm:$0xff]   ;;  %v1465_v47 = vld [vmem:[#allocation10 + $0x10] sm:$0xff]  }
 0x314   :  { %v798_v50 = vrot.slane %v797_v48, 1  ;;  %1349 = vmatpush3.bf16.msra.mxu0 %v1462_v45 }
 0x315   :  { %1350 = vmatprep.subr.bf16.mxu0 %v1463_v46 }
 0x316   :  { %v799_v51 = vadd.f32 %v798_v50, %v797_v48  ;;  %v1466_v48 = vld [vmem:[#allocation10 + $0x8] sm:$0xff]   ;;  %v1467_v50 = vld [vmem:[#allocation10] sm:$0xff]  }
 0x318   :  { %v800_v52 = vmul.f32 0.03125, %v799_v51  ;;  %1351 = vmatpush3.bf16.msra.mxu0 %v1463_v46  ;;  %v877_v51 = vld [vmem:[%s1892_s6] sm:$0x3] }
 0x31a   :  { %v801_v53 = vadd.f32 1e-05, %v800_v52  ;;  %v886_v52 = vrot.slane %v877_v51, %v1722_v33 }
 0x31c   :  { %1486 = vrsqrt.f32 %v801_v53 }
 0x329   :  { %v1487_v56 = vpop.eup %1486 }
 0x32a   :  { %v806_v58 = vmul.f32 %v1487_v56, %v786_v36  ;;  %v803_v59 = vmul.f32 %v1487_v56, %v783_v25  ;;  %v804_v60 = vmul.f32 %v1487_v56, %v784_v34  ;;  %v805_v61 = vmul.f32 %v1487_v56, %v785_v35 }
 0x32c   :  { %v1815_v63 = vmax.f32 %v806_v58, 0.0  ;;  %v1817_v1 = vmax.f32 %v803_v59, 0.0  ;;  %v1819_v2 = vmax.f32 %v804_v60, 0.0  ;;  %v1821_v3 = vmax.f32 %v805_v61, 0.0 }
 0x32e   :  { %v811_v5 = vrot.slane %v1817_v1, 7  ;;  %v812_v6 = vrot.slane %v1819_v2, 7  ;;  %v814_v7 = vrot.slane %v1815_v63, 7  ;;  %v835_v8 = vrot.slane %v1817_v1, 6 }
 0x32f   :  { %v838_v9 = vrot.slane %v1815_v63, 6  ;;  %v836_v12 = vrot.slane %v1819_v2, 6  ;;  %v813_v15 = vrot.slane %v1821_v3, 7  ;;  %v837_v17 = vrot.slane %v1821_v3, 6 }
 0x330   :  { %v817_v10 = vsel %vm524_vm1, %v811_v5, %v812_v6  ;;  %v818_v11 = vsel %vm524_vm1, %v814_v7, %v811_v5 }
 0x331   :  { %825 = vrot.lane.b32.xlu1 %v817_v10, %s1638_s2  ;;  %v819_v13 = vsel %vm1743_vm2, %v818_v11, 0.0  ;;  %v842_v14 = vsel %vm553_vm0, %v838_v9, %v835_v8  ;;  %v841_v19 = vsel %vm553_vm0, %v835_v8, %v836_v12  ;;  %v816_v24 = vsel %vm524_vm1, %v812_v6, %v813_v15 }
 0x332   :  { %823 = vrot.lane.b32.xlu0 %v819_v13, %s1638_s2  ;;  %v843_v16 = vsel %vm1763_vm3, %v842_v14, 0.0  ;;  %v815_v18 = vsel %vm524_vm1, %v813_v15, %v814_v7  ;;  %v821_v22 = vsel %vm1778_vm4, %v816_v24, 0.0  ;;  %v840_v37 = vsel %vm553_vm0, %v836_v12, %v837_v17 }
 0x333   :  { %v839_v20 = vsel %vm553_vm0, %v837_v17, %v838_v9  ;;  %v845_v23 = vsel %vm1791_vm5, %v840_v37, 0.0 }
 0x335   :  { %849 = vrot.lane.b32.xlu1 %v841_v19, %s1633_s25 }
 0x336   :  { %847 = vrot.lane.b32.xlu0 %v843_v16, %s1633_s25  ;;  %v882_v16 = vrot.slane %v877_v51, %v1730_v4 }
 0x339   :  { %829 = vrot.lane.b32.xlu1 %v815_v18, %s1638_s2 }
 0x33a   :  { %827 = vrot.lane.b32.xlu0 %v821_v22, %s1638_s2 }
 0x33d   :  { %853 = vrot.lane.b32.xlu1 %v839_v20, %s1633_s25 }
 0x33e   :  { %851 = vrot.lane.b32.xlu0 %v845_v23, %s1633_s25 }
 0x3a3   :  { %v826_v26 = vpop.permute.xlu1 %825 }
 0x3a4   :  { %v824_v27 = vpop.permute.xlu0 %823  ;;  %v832_v44 = vadd.f32 %v826_v26, %v1819_v2 }
 0x3a5   :  { %v831_v28 = vadd.f32 %v824_v27, %v1817_v1 }
 0x3a7   :  { %v850_v29 = vpop.permute.xlu1 %849 }
 0x3a8   :  { %v856_v30 = vadd.f32 %v850_v29, %v832_v44  ;;  %v848_v32 = vpop.permute.xlu0 %847 }
 0x3a9   :  { %v855_v25 = vadd.f32 %v848_v32, %v831_v28 }
 0x3ab   :  { %v859_v34 = vpack.c.bf16 %v856_v30, %v855_v25  ;;  %v830_v31 = vpop.permute.xlu1 %829 }
 0x3ac   :  { %v828_v35 = vpop.permute.xlu0 %827  ;;  %v834_v36 = vadd.f32 %v830_v31, %v1815_v63 }
 0x3ad   :  { %1002 = vmatmul.mubr.bf16.vlgmr.msra.gmra.mxu1 %v859_v34  ;;  %v833_v49 = vadd.f32 %v828_v35, %v1821_v3 }
 0x3ae   :  { %1011 = vmatprep.mubr.bf16.mxu1 %v1637_v0  ;;  %v1464_v0 = vld [vmem:[#allocation10 + $0x18] sm:$0xff]  }
 0x3af   :  { %v854_v38 = vpop.permute.xlu1 %853  ;;  %1352 = vmatprep.subr.bf16.mxu0 %v1464_v0 }
 0x3b0   :  { %v858_v40 = vadd.f32 %v854_v38, %v834_v36  ;;  %v852_v41 = vpop.permute.xlu0 %851  ;;  %1353 = vmatpush3.bf16.msra.mxu0 %v1464_v0 }
 0x3b1   :  { %v857_v42 = vadd.f32 %v852_v41, %v833_v49  ;;  %1354 = vmatprep.subr.bf16.mxu0 %v1465_v47 }
 0x3b3   :  { %v860_v43 = vpack.c.bf16 %v858_v40, %v857_v42 }
 0x3b4   :  { %1355 = vmatpush3.bf16.msra.mxu0 %v1465_v47 }
 0x3b5   :  { %1012 = vmatmul.mubr.bf16.gmra.mxu1 %v860_v43  ;;  %1356 = vmatprep.subr.bf16.mxu0 %v1466_v48 }
 0x3b8   :  { %1357 = vmatpush3.bf16.msra.mxu0 %v1466_v48 }
 0x3b9   :  { %1358 = vmatprep.subr.bf16.mxu0 %v1467_v50 }
 0x3bc   :  { %1359 = vmatpush3.bf16.msra.mxu0 %v1467_v50 }
 0x46d   :  { %v1003_v53 = vpop.f32.mrf.mxu1 }
 0x46e   :  { %v1004_v26 = vadd.f32 %v1003_v53, %v882_v16 }
 0x46f   :  { %v1005_v54 = vpop.f32.mrf.mxu1 }
 0x470   :  { %v1006_v55 = vadd.f32 %v1005_v54, %v886_v52 }
 0x471   :  { %v1007_v56 = vpop.f32.mrf.mxu1 }
 0x472   :  { %v1022_v57 = vmul.f32 0.5, %v1006_v55  ;;  %v1008_v22 = vadd.f32 %v1007_v56, %v882_v16 }
 0x473   :  { %v1009_v58 = vpop.f32.mrf.mxu1 }
 0x474   :  { %1488 = vtanh.f32 %v1022_v57  ;;  %v1010_v59 = vadd.f32 %v1009_v58, %v886_v52 }
 0x475   :  { %v1013_v60 = vpop.f32.mrf.mxu1 }
 0x476   :  { %v1023_v61 = vmul.f32 0.5, %v1010_v59  ;;  %v1014_v27 = vadd.f32 %v1013_v60, %v882_v16 }
 0x477   :  { %v1015_v62 = vpop.f32.mrf.mxu1 }
 0x478   :  { %1490 = vtanh.f32 %v1023_v61  ;;  %v1016_v5 = vadd.f32 %v1015_v62, %v886_v52 }
 0x479   :  { %v1017_v6 = vpop.f32.mrf.mxu1 }
 0x47a   :  { %v1024_v7 = vmul.f32 0.5, %v1016_v5  ;;  %v1018_v49 = vadd.f32 %v1017_v6, %v882_v16 }
 0x47b   :  { %v1019_v8 = vpop.f32.mrf.mxu1 }
 0x47c   :  { %1492 = vtanh.f32 %v1024_v7  ;;  %v1020_v9 = vadd.f32 %v1019_v8, %v886_v52 }
 0x47e   :  { %v1025_v10 = vmul.f32 0.5, %v1020_v9 }
 0x480   :  { %1494 = vtanh.f32 %v1025_v10 }
 0x481   :  { %v1489_v33 = vpop.eup %1488 }
 0x482   :  { %v1030_v11 = vmul.f32 0.5, %v1489_v33 }
 0x484   :  { %v1034_v13 = vadd.f32 0.5, %v1030_v11 }
 0x485   :  { %v1491_v12 = vpop.eup %1490 }
 0x486   :  { %v1031_v14 = vmul.f32 0.5, %v1491_v12  ;;  %v1042_v24 = vsub.f32 1.0, %v1034_v13  ;;  %v1038_v32 = vmul.f32 %v1034_v13, %v1004_v26 }
 0x488   :  { %v1035_v15 = vadd.f32 0.5, %v1031_v14  ;;  %v1046_v44 = vmul.f32 %v1042_v24, %v1817_v1 }
 0x489   :  { %v1493_v19 = vpop.eup %1492 }
 0x48a   :  { %v1043_v17 = vsub.f32 1.0, %v1035_v15  ;;  %v1032_v18 = vmul.f32 0.5, %v1493_v19  ;;  %v1039_v28 = vmul.f32 %v1035_v15, %v1008_v22  ;;  %v1050_v35 = vadd.f32 %v1046_v44, %v1038_v32 }
 0x48c   :  { %v1047_v37 = vmul.f32 %v1043_v17, %v1819_v2  ;;  %v1036_v20 = vadd.f32 0.5, %v1032_v18  ;;  %v1295_v17 = vld [vmem:[%s1894_s8] ss:$0 sm:$0xff] }
 0x48d   :  { %v1495_v23 = vpop.eup %1494 }
 0x48e   :  { %v1044_v29 = vsub.f32 1.0, %v1036_v20  ;;  %v1033_v30 = vmul.f32 0.5, %v1495_v23  ;;  %v1051_v25 = vadd.f32 %v1047_v37, %v1039_v28  ;;  %v1040_v34 = vmul.f32 %v1036_v20, %v1014_v27 }
 0x490   :  { %v1048_v4 = vmul.f32 %v1044_v29, %v1821_v3  ;;  %v1037_v31 = vadd.f32 0.5, %v1033_v30  ;;  %v1054_v2 = vadd.f32 %v1051_v25, %v1050_v35 }
 0x492   :  { %v1052_v36 = vadd.f32 %v1048_v4, %v1040_v34  ;;  %v1045_v38 = vsub.f32 1.0, %v1037_v31  ;;  %v1041_v40 = vmul.f32 %v1037_v31, %v1018_v49 }
 0x494   :  { %v1049_v41 = vmul.f32 %v1045_v38, %v1815_v63  ;;  %v1055_v42 = vadd.f32 %v1054_v2, %v1052_v36 }
 0x496   :  { %v1053_v43 = vadd.f32 %v1049_v41, %v1041_v40 }
 0x498   :  { %v1056_v1 = vadd.f32 %v1055_v42, %v1053_v43 }
 0x49a   :  { %v1057_v21 = vrot.slane %v1056_v1, 4 }
 0x49c   :  { %v1058_v39 = vadd.f32 %v1057_v21, %v1056_v1 }
 0x49e   :  { %v1059_v45 = vrot.slane %v1058_v39, 2 }
 0x4a0   :  { %v1060_v46 = vadd.f32 %v1059_v45, %v1058_v39 }
 0x4a2   :  { %v1061_v0 = vrot.slane %v1060_v46, 1 }
 0x4a4   :  { %v1062_v47 = vadd.f32 %v1061_v0, %v1060_v46 }
 0x4a6   :  { %v1063_v48 = vmul.f32 0.03125, %v1062_v47 }
 0x4a8   :  { %v1064_v3 = vsub.f32 %v1050_v35, %v1063_v48  ;;  %v1065_v50 = vsub.f32 %v1051_v25, %v1063_v48  ;;  %v1066_v51 = vsub.f32 %v1052_v36, %v1063_v48  ;;  %v1067_v52 = vsub.f32 %v1053_v43, %v1063_v48 }
 0x4aa   :  { %v1068_v53 = vmul.f32 %v1064_v3, %v1064_v3  ;;  %v1069_v54 = vmul.f32 %v1065_v50, %v1065_v50  ;;  %v1070_v55 = vmul.f32 %v1066_v51, %v1066_v51  ;;  %v1071_v57 = vmul.f32 %v1067_v52, %v1067_v52 }
 0x4ac   :  { %v1072_v56 = vadd.f32 %v1069_v54, %v1068_v53 }
 0x4ae   :  { %v1073_v63 = vadd.f32 %v1072_v56, %v1070_v55 }
 0x4b0   :  { %v1074_v58 = vadd.f32 %v1073_v63, %v1071_v57 }
 0x4b2   :  { %v1075_v59 = vrot.slane %v1074_v58, 4 }
 0x4b4   :  { %v1076_v60 = vadd.f32 %v1075_v59, %v1074_v58 }
 0x4b6   :  { %v1077_v61 = vrot.slane %v1076_v60, 2 }
 0x4b8   :  { %v1078_v62 = vadd.f32 %v1077_v61, %v1076_v60 }
 0x4ba   :  { %v1079_v5 = vrot.slane %v1078_v62, 1 }
 0x4bc   :  { %v1080_v6 = vadd.f32 %v1079_v5, %v1078_v62 }
 0x4be   :  { %v1081_v7 = vmul.f32 0.03125, %v1080_v6 }
 0x4c0   :  { %v1082_v8 = vadd.f32 1e-05, %v1081_v7 }
 0x4c2   :  { %1496 = vrsqrt.f32 %v1082_v8 }
 0x4cf   :  { %v1497_v9 = vpop.eup %1496 }
 0x4d0   :  { %v1084_v10 = vmul.f32 %v1497_v9, %v1064_v3  ;;  %v1085_v33 = vmul.f32 %v1497_v9, %v1065_v50  ;;  %v1086_v11 = vmul.f32 %v1497_v9, %v1066_v51  ;;  %v1087_v12 = vmul.f32 %v1497_v9, %v1067_v52 }
 0x4d2   :  { %v1088_v13 = vmax.f32 %v1084_v10, 0.0  ;;  %v1089_v14 = vmax.f32 %v1085_v33, 0.0  ;;  %v1090_v15 = vmax.f32 %v1086_v11, 0.0  ;;  %v1091_v19 = vmax.f32 %v1087_v12, 0.0 }
 0x4d4   :  { %v1092_v16 = vpack.c.bf16 %v1089_v14, %v1088_v13  ;;  %v1093_v24 = vpack.c.bf16 %v1091_v19, %v1090_v15 }
 0x4d6   :  { %1360 = vmatprep.mubr.bf16.mxu0 %v1092_v16 }
 0x4d7   :  { %1361 = vmatmul.mubr.bf16.vlgmr.msra.gmra.mxu0 %v1093_v24 }
 0x597   :  { %v1362_v18 = vpop.f32.mrf.mxu0 }
 0x598   :  { %v1208_v22 = vadd.f32 %v1362_v18, %v1295_v17 }
 0x599   :  { %v1199_v37 = vpop.f32.mrf.mxu0 }
 0x59a   :  { %1216 = vst [vmem:[#allocation11 + $0x10] sm:$0xff] %v1208_v22  ;;  %v1200_v20 = vadd.f32 %v1295_v17, %v1199_v37 }
 0x59b   :  { %v1363_v23 = vpop.f32.mrf.mxu0 }
 0x59c   :  { %1214 = vst [vmem:[#allocation11] sm:$0xff] %v1200_v20  ;;  %v1211_v26 = vadd.f32 %v1363_v23, %v1295_v17 }
 0x59d   :  { %v1202_v27 = vpop.f32.mrf.mxu0 }
 0x59e   :  { %1217 = vst [vmem:[#allocation11 + $0x18] sm:$0xff] %v1211_v26  ;;  %v1203_v44 = vadd.f32 %v1295_v17, %v1202_v27 }
 0x5a0   :  { %1215 = vst [vmem:[#allocation11 + $0x8] sm:$0xff] %v1203_v44 }
 0x5a1   :  { %1609 = shalt.err (!%p1606_p1)
}
 0x5a2   :  { %1229 = dma.vmem_to_hbm [thread:$0]  %s1224_s23, 512, %s1895_s9, [#allocation4], %s1631_s21, %s1631_s21, %s1632_s22  }
 0x5a3   :  { %1624 = dma.done.wait [#allocation4], 512  }
 0x5a4   :  { %1625 = vsyncadd [#allocation4], 4294966784 }
 0x5a5   :  { %1233 = vsyncpa [#allocation3], 1 }
 0x5a6   :  { %1234 = vsyncpa [#allocation6], 1 }
 0x5a7   :  { %1235 = vsyncpa [#allocation9], 1 }
 0x5a8   :  { %1236 = vsyncpa [#allocation4], 1 }

</bundles_post_ra>
